<compile_context>
chip_gen: v7x
topology: tpu7x:2x2x1
jax: 0.10.0
libtpu: 0.0.40
codegen_flags: <defaults>
</compile_context>

<pallas_src>
import jax
import jax.numpy as jnp
from jax.experimental import pallas as pl
from jax.experimental.pallas import tpu as pltpu


def _round_up(x, m):
    return ((x + m - 1) // m) * m


def labquad_kernel(spec_ref, time_ref, org_ref, val_ref,
                   ws_ref, wt_ref, wo_ref, wv_ref, b_ref, o_ref):
    # spec/time/org/val refs: (TILE_N, 1); w*/b refs: (1, E); o_ref: (TILE_N, E).
    # (TILE_N,1) broadcasts across lanes, (1,E) across sublanes -> pure VPU chain.
    o_ref[...] = (
        b_ref[...]
        + spec_ref[...] * ws_ref[...]
        + time_ref[...] * wt_ref[...]
        + org_ref[...] * wo_ref[...]
        + val_ref[...] * wv_ref[...]
    )


def _choose_tiling(N, E, vmem_budget_bytes=24 << 20):
    """Pick (tile_n, grid_n, n_pad) under a VMEM budget, minimizing pad waste."""
    # Per-row VMEM bytes per pipeline buffer:
    #   output row: E * 4 (f32)
    #   each (tile_n, 1) f32 input column lane-pads to a full (8,128) tile row
    #   in VMEM -> 512 B/row; four columns -> 2048 B/row.
    bytes_per_row = E * 4 + 4 * 512
    cap = (vmem_budget_bytes // (2 * bytes_per_row)) // 8 * 8  # x2: double-buffered
    cap = max(cap, 8)
    n8 = _round_up(max(N, 1), 8)
    grid_n = -(-n8 // cap)                       # ceil
    tile_n = _round_up(-(-n8 // grid_n), 8)      # balanced tiles, pad <= 8*grid_n rows
    return tile_n, grid_n, tile_n * grid_n


def labquad_forward(spec, time, org, val, params):
    """spec/time/org/val: (B, S, 1) float32. Returns (B, S, E) float32."""
    B, S, _ = spec.shape
    E = params["w_spec"].shape[0]
    N = B * S

    tile_n, grid_n, n_pad = _choose_tiling(N, E)

    def prep(x):
        x = x.reshape(N, 1).astype(jnp.float32)
        if n_pad != N:
            x = jnp.pad(x, ((0, n_pad - N), (0, 0)))
        return x

    spec_c = prep(spec)
    time_c = prep(time)
    org_c = prep(org)
    val_c = prep(val)

    # Each PyTorch weight is (E, 1) -> present as a (1, E) row for lane-dense broadcast.
    ws = params["w_spec"].reshape(1, E).astype(jnp.float32)
    wt = params["w_time"].reshape(1, E).astype(jnp.float32)
    wo = params["w_org"].reshape(1, E).astype(jnp.float32)
    wv = params["w_val"].reshape(1, E).astype(jnp.float32)
    # The four biases always add together in the forward -> pre-sum once.
    b = (params["b_spec"] + params["b_time"] + params["b_org"]
         + params["b_val"]).reshape(1, E).astype(jnp.float32)

    col_spec = pl.BlockSpec((tile_n, 1), lambda i: (i, 0))
    row_spec = pl.BlockSpec((1, E), lambda i: (0, 0))  # constant block, stays VMEM-resident

    cost = pl.CostEstimate(
        flops=8 * n_pad * E,
        transcendentals=0,
        bytes_accessed=n_pad * E * 4 + n_pad * 4 * 4 + 5 * E * 4,
    )

    out = pl.pallas_call(
        labquad_kernel,
        out_shape=jax.ShapeDtypeStruct((n_pad, E), jnp.float32),
        grid_spec=pltpu.PrefetchScalarGridSpec(
            num_scalar_prefetch=0,
            grid=(grid_n,),
            in_specs=[col_spec, col_spec, col_spec, col_spec,
                      row_spec, row_spec, row_spec, row_spec, row_spec],
            out_specs=pl.BlockSpec((tile_n, E), lambda i: (i, 0)),
        ),
        compiler_params=pltpu.CompilerParams(
            dimension_semantics=("parallel",),
        ),
        cost_estimate=cost,
    )(spec_c, time_c, org_c, val_c, ws, wt, wo, wv, b)

    if n_pad != N:
        out = out[:N]
    return out.reshape(B, S, E)


def init_params(key, embed_dim):
    """Deterministic synthetic init matching nn.Linear(1, embed_dim) shapes."""
    keys = jax.random.split(key, 8)
    names = ["spec", "time", "org", "val"]
    params = {}
    # nn.Linear(1, E): weight (E, 1), bias (E,); uniform(-1, 1) since fan_in=1.
    for i, n in enumerate(names):
        params[f"w_{n}"] = jax.random.uniform(
            keys[2 * i], (embed_dim, 1), jnp.float32, -1.0, 1.0
        )
        params[f"b_{n}"] = jax.random.uniform(
            keys[2 * i + 1], (embed_dim,), jnp.float32, -1.0, 1.0
        )
    return params


def labquad_reference(spec, time, org, val, params):
    """Pure-JAX reference replicating the PyTorch forward exactly."""
    def lin(x, w, b):  # x: (..., 1), w: (E, 1), b: (E,)
        return x @ w.T + b

    return (
        lin(spec, params["w_spec"], params["b_spec"])
        + lin(time, params["w_time"], params["b_time"])
        + lin(org, params["w_org"], params["b_org"])
        + lin(val, params["w_val"], params["b_val"])
    )


if __name__ == "__main__":
    # Small batch/sequence; E = 768 (the module default, a multiple of 128 so the
    # output stores are fully lane-dense / unmasked).
    B, S, E = 2, 8, 768

    key = jax.random.PRNGKey(0)
    kp, ks, kt, ko, kv = jax.random.split(key, 5)

    params = init_params(kp, E)
    spec = jax.random.normal(ks, (B, S, 1), jnp.float32)
    time = jax.random.normal(kt, (B, S, 1), jnp.float32)
    org = jax.random.normal(ko, (B, S, 1), jnp.float32)
    val = jax.random.normal(kv, (B, S, 1), jnp.float32)

    fwd = jax.jit(labquad_forward)
    out = fwd(spec, time, org, val, params)
    out = jax.block_until_ready(out)

    ref = labquad_reference(spec, time, org, val, params)
    assert out.shape == (B, S, E)
    assert jnp.allclose(out, ref, atol=1e-5, rtol=1e-5), "mismatch vs reference"

    print("KERNEL_OK")
</pallas_src>

<mosaic_0001>
module attributes {stable_mosaic.version = 11 : i64} {
  func.func @labquad_kernel(%arg0: i32, %arg1: memref<16x1xf32, #tpu.memory_space<vmem>>, %arg2: memref<16x1xf32, #tpu.memory_space<vmem>>, %arg3: memref<16x1xf32, #tpu.memory_space<vmem>>, %arg4: memref<16x1xf32, #tpu.memory_space<vmem>>, %arg5: memref<1x768xf32, #tpu.memory_space<vmem>>, %arg6: memref<1x768xf32, #tpu.memory_space<vmem>>, %arg7: memref<1x768xf32, #tpu.memory_space<vmem>>, %arg8: memref<1x768xf32, #tpu.memory_space<vmem>>, %arg9: memref<1x768xf32, #tpu.memory_space<vmem>>, %arg10: memref<16x768xf32, #tpu.memory_space<vmem>>) attributes {dimension_semantics = [#tpu.dimension_semantics<parallel>], iteration_bounds = array<i64: 1>, scalar_prefetch = 0 : i64, scratch_operands = 0 : i64, tpu.core_type = #tpu.core_type<tc>, window_params = [{transform_indices = @transform_0, window_bounds = array<i64: 16, 1>}, {transform_indices = @transform_1, window_bounds = array<i64: 16, 1>}, {transform_indices = @transform_2, window_bounds = array<i64: 16, 1>}, {transform_indices = @transform_3, window_bounds = array<i64: 16, 1>}, {pipeline_mode = #tpu.pipeline_mode<synchronous>, transform_indices = @transform_4, window_bounds = array<i64: 1, 768>}, {pipeline_mode = #tpu.pipeline_mode<synchronous>, transform_indices = @transform_5, window_bounds = array<i64: 1, 768>}, {pipeline_mode = #tpu.pipeline_mode<synchronous>, transform_indices = @transform_6, window_bounds = array<i64: 1, 768>}, {pipeline_mode = #tpu.pipeline_mode<synchronous>, transform_indices = @transform_7, window_bounds = array<i64: 1, 768>}, {pipeline_mode = #tpu.pipeline_mode<synchronous>, transform_indices = @transform_8, window_bounds = array<i64: 1, 768>}, {transform_indices = @transform_9, window_bounds = array<i64: 16, 768>}]} {
    %c0 = arith.constant 0 : index
    %c0_0 = arith.constant 0 : index
    %0 = vector.load %arg9[%c0, %c0_0] : memref<1x768xf32, #tpu.memory_space<vmem>>, vector<1x768xf32>
    %c0_1 = arith.constant 0 : index
    %c0_2 = arith.constant 0 : index
    %1 = vector.load %arg1[%c0_1, %c0_2] : memref<16x1xf32, #tpu.memory_space<vmem>>, vector<16x1xf32>
    %c0_3 = arith.constant 0 : index
    %c0_4 = arith.constant 0 : index
    %2 = vector.load %arg5[%c0_3, %c0_4] : memref<1x768xf32, #tpu.memory_space<vmem>>, vector<1x768xf32>
    %3 = vector.broadcast %1 : vector<16x1xf32> to vector<16x768xf32>
    %4 = vector.broadcast %2 : vector<1x768xf32> to vector<16x768xf32>
    %5 = arith.mulf %3, %4 : vector<16x768xf32>
    %6 = vector.broadcast %0 : vector<1x768xf32> to vector<16x768xf32>
    %7 = arith.addf %6, %5 : vector<16x768xf32>
    %c0_5 = arith.constant 0 : index
    %c0_6 = arith.constant 0 : index
    %8 = vector.load %arg2[%c0_5, %c0_6] : memref<16x1xf32, #tpu.memory_space<vmem>>, vector<16x1xf32>
    %c0_7 = arith.constant 0 : index
    %c0_8 = arith.constant 0 : index
    %9 = vector.load %arg6[%c0_7, %c0_8] : memref<1x768xf32, #tpu.memory_space<vmem>>, vector<1x768xf32>
    %10 = vector.broadcast %8 : vector<16x1xf32> to vector<16x768xf32>
    %11 = vector.broadcast %9 : vector<1x768xf32> to vector<16x768xf32>
    %12 = arith.mulf %10, %11 : vector<16x768xf32>
    %13 = arith.addf %7, %12 : vector<16x768xf32>
    %c0_9 = arith.constant 0 : index
    %c0_10 = arith.constant 0 : index
    %14 = vector.load %arg3[%c0_9, %c0_10] : memref<16x1xf32, #tpu.memory_space<vmem>>, vector<16x1xf32>
    %c0_11 = arith.constant 0 : index
    %c0_12 = arith.constant 0 : index
    %15 = vector.load %arg7[%c0_11, %c0_12] : memref<1x768xf32, #tpu.memory_space<vmem>>, vector<1x768xf32>
    %16 = vector.broadcast %14 : vector<16x1xf32> to vector<16x768xf32>
    %17 = vector.broadcast %15 : vector<1x768xf32> to vector<16x768xf32>
    %18 = arith.mulf %16, %17 : vector<16x768xf32>
    %19 = arith.addf %13, %18 : vector<16x768xf32>
    %c0_13 = arith.constant 0 : index
    %c0_14 = arith.constant 0 : index
    %20 = vector.load %arg4[%c0_13, %c0_14] : memref<16x1xf32, #tpu.memory_space<vmem>>, vector<16x1xf32>
    %c0_15 = arith.constant 0 : index
    %c0_16 = arith.constant 0 : index
    %21 = vector.load %arg8[%c0_15, %c0_16] : memref<1x768xf32, #tpu.memory_space<vmem>>, vector<1x768xf32>
    %22 = vector.broadcast %20 : vector<16x1xf32> to vector<16x768xf32>
    %23 = vector.broadcast %21 : vector<1x768xf32> to vector<16x768xf32>
    %24 = arith.mulf %22, %23 : vector<16x768xf32>
    %25 = arith.addf %19, %24 : vector<16x768xf32>
    %c0_17 = arith.constant 0 : index
    %c0_18 = arith.constant 0 : index
    %26 = vector.load %arg10[%c0_17, %c0_18] : memref<16x768xf32, #tpu.memory_space<vmem>>, vector<16x768xf32>
    tpu.vector_store %arg10[%c0_17, %c0_18], %25 {strides = array<i32>} : memref<16x768xf32, #tpu.memory_space<vmem>>, vector<16x768xf32>,
    return
  }
  func.func @transform_0(%arg0: i32) -> (i32, i32) {
    %c0_i32 = arith.constant 0 : i32
    %c0_i32_0 = arith.constant 0 : i32
    return %arg0, %c0_i32 : i32, i32
  }
  func.func @transform_1(%arg0: i32) -> (i32, i32) {
    %c0_i32 = arith.constant 0 : i32
    %c0_i32_0 = arith.constant 0 : i32
    return %arg0, %c0_i32 : i32, i32
  }
  func.func @transform_2(%arg0: i32) -> (i32, i32) {
    %c0_i32 = arith.constant 0 : i32
    %c0_i32_0 = arith.constant 0 : i32
    return %arg0, %c0_i32 : i32, i32
  }
  func.func @transform_3(%arg0: i32) -> (i32, i32) {
    %c0_i32 = arith.constant 0 : i32
    %c0_i32_0 = arith.constant 0 : i32
    return %arg0, %c0_i32 : i32, i32
  }
  func.func @transform_4(%arg0: i32) -> (i32, i32) {
    %c0_i32 = arith.constant 0 : i32
    %c0_i32_0 = arith.constant 0 : i32
    %c0_i32_1 = arith.constant 0 : i32
    return %c0_i32, %c0_i32_0 : i32, i32
  }
  func.func @transform_5(%arg0: i32) -> (i32, i32) {
    %c0_i32 = arith.constant 0 : i32
    %c0_i32_0 = arith.constant 0 : i32
    %c0_i32_1 = arith.constant 0 : i32
    return %c0_i32, %c0_i32_0 : i32, i32
  }
  func.func @transform_6(%arg0: i32) -> (i32, i32) {
    %c0_i32 = arith.constant 0 : i32
    %c0_i32_0 = arith.constant 0 : i32
    %c0_i32_1 = arith.constant 0 : i32
    return %c0_i32, %c0_i32_0 : i32, i32
  }
  func.func @transform_7(%arg0: i32) -> (i32, i32) {
    %c0_i32 = arith.constant 0 : i32
    %c0_i32_0 = arith.constant 0 : i32
    %c0_i32_1 = arith.constant 0 : i32
    return %c0_i32, %c0_i32_0 : i32, i32
  }
  func.func @transform_8(%arg0: i32) -> (i32, i32) {
    %c0_i32 = arith.constant 0 : i32
    %c0_i32_0 = arith.constant 0 : i32
    %c0_i32_1 = arith.constant 0 : i32
    return %c0_i32, %c0_i32_0 : i32, i32
  }
  func.func @transform_9(%arg0: i32) -> (i32, i32) {
    %c0_i32 = arith.constant 0 : i32
    %c0_i32_0 = arith.constant 0 : i32
    return %arg0, %c0_i32 : i32, i32
  }
}

</mosaic_0001>

<bundles_post_ra>
// kernel: labquad_forward.1
= control target key start
LH: loop header
LB: loop body
LE: loop exit
PB: predicated region body
PF: predicated region fallthrough
CT: control target
= control target key end

     0   :  { %v395_v2 = vmov 0   ;;  %s554_s0 = inlined_call_operand.vmem [shape: f32[16,1], index: 0, kind: input, shape index: {}]   ;;  %s555_s1 = inlined_call_operand.vmem [shape: f32[16,1], index: 1, kind: input, shape index: {}]   ;;  %s556_s2 = inlined_call_operand.vmem [shape: f32[16,1], index: 2, kind: input, shape index: {}]   ;;  %s557_s3 = inlined_call_operand.vmem [shape: f32[16,1], index: 3, kind: input, shape index: {}]   ;;  %s558_s4 = inlined_call_operand.vmem [shape: f32[1,768], index: 4, kind: input, shape index: {}]   ;;  %s559_s5 = inlined_call_operand.vmem [shape: f32[1,768], index: 5, kind: input, shape index: {}]   ;;  %s560_s6 = inlined_call_operand.vmem [shape: f32[1,768], index: 6, kind: input, shape index: {}]   ;;  %s561_s7 = inlined_call_operand.vmem [shape: f32[1,768], index: 7, kind: input, shape index: {}]   ;;  %s562_s8 = inlined_call_operand.vmem [shape: f32[1,768], index: 8, kind: input, shape index: {}]   ;;  %s563_s9 = inlined_call_operand.hbm [shape: f32[16,768], index: 9, kind: output, shape index: {}]  }
   0x1   :  { %v133_v0 = vld [vmem:[%s555_s1] sm:$0xff]  ;;  %370 = vset.pattern.permute.xlu1 %v395_v2  ;;  %369 = vset.pattern.permute.xlu0 %v395_v2  ;;  %v134_v3 = vld [vmem:[%s555_s1 + $0x8] sm:$0xff] }
   0x2   :  { %v34_v1 = vld [vmem:[%s554_s0] sm:$0xff]  ;;  %138 = vperm.xlu1 %370, %v133_v0   ;;  %v35_v4 = vld [vmem:[%s554_s0 + $0x8] sm:$0xff] }
   0x3   :  { %39 = vperm.xlu0 %369, %v34_v1  }
   0x4   :  { %14 = vsyncpa [#allocation3], 0  ;;  %v202_v5 = vld [vmem:[%s556_s2 + $0x8] sm:$0xff]  ;;  %v201_v6 = vld [vmem:[%s556_s2] sm:$0xff]  ;;  %v48_v9 = vlaneseq }
   0x5   :  { %v270_v7 = vld [vmem:[%s557_s3 + $0x8] sm:$0xff]  ;;  %v269_v8 = vld [vmem:[%s557_s3] sm:$0xff] }
   0x6   :  { %143 = vperm.xlu1 %370, %v134_v3   ;;  %v49_v10 = vshrl.u32 %v48_v9, 7  ;;  %v135_v17 = vld [vmem:[%s559_s5] sm:$0x3f] }
   0x7   :  { %44 = vperm.xlu0 %369, %v35_v4   ;;  %v36_v18 = vld [vmem:[%s558_s4] sm:$0x3f] }
   0x8   :  { %v50_v11 = vsub.s32 0, %v49_v10  ;;  %v54_v12 = vsub.s32 1, %v49_v10  ;;  %v58_v13 = vsub.s32 2, %v49_v10  ;;  %v62_v14 = vsub.s32 3, %v49_v10  ;;  %v33_v23 = vld [vmem:[%s562_s8] sm:$0x3f] }
   0x9   :  { %v66_v15 = vsub.s32 4, %v49_v10  ;;  %v70_v16 = vsub.s32 5, %v49_v10  ;;  %v203_v28 = vld [vmem:[%s560_s6] sm:$0x3f]  ;;  %s396_s6 = smov [#allocation2]  }
   0xa   :  { %211 = vperm.xlu1 %370, %v202_v5   ;;  %v150_v19 = vrot.slane %v135_v17, %v50_v11  ;;  %v154_v20 = vrot.slane %v135_v17, %v54_v12  ;;  %v158_v21 = vrot.slane %v135_v17, %v58_v13  ;;  %v162_v22 = vrot.slane %v135_v17, %v62_v14  ;;  %v271_v37 = vld [vmem:[%s561_s7] sm:$0x3f]  ;;  %s354_s7 = sshll.u32 %s396_s6, 4  ;;  %s355_s7 = int_to_ptr.vmem [resolvable:$true] %s354_s7 }
   0xb   :  { %206 = vperm.xlu0 %369, %v201_v6   ;;  %v166_v24 = vrot.slane %v135_v17, %v66_v15  ;;  %v170_v25 = vrot.slane %v135_v17, %v70_v16  ;;  %v51_v26 = vrot.slane %v36_v18, %v50_v11  ;;  %v55_v27 = vrot.slane %v36_v18, %v54_v12  ;;  %s371_s8 = scalar_lea.vmem %s355_s7, 1536  ;;  %p376_p1 = scmp.lt.s32.totalorder %s355_s7, %s355_s7 }
   0xc   :  { %v59_v29 = vrot.slane %v36_v18, %v58_v13  ;;  %v63_v30 = vrot.slane %v36_v18, %v62_v14  ;;  %v67_v31 = vrot.slane %v36_v18, %v66_v15  ;;  %v71_v32 = vrot.slane %v36_v18, %v70_v16  ;;  %p372_p0 = scmp.ne.s32.totalorder %s355_s7, %s371_s8  ;;  %p377_p2 = scmp.lt.s32.totalorder %s371_s8, %s371_s8 }
   0xd   :  { %v94_v33 = vrot.slane %v33_v23, %v50_v11  ;;  %v98_v34 = vrot.slane %v33_v23, %v54_v12  ;;  %v102_v35 = vrot.slane %v33_v23, %v58_v13  ;;  %v106_v36 = vrot.slane %v33_v23, %v62_v14 }
   0xe   :  { %279 = vperm.xlu1 %370, %v270_v7   ;;  %v110_v38 = vrot.slane %v33_v23, %v66_v15  ;;  %v114_v39 = vrot.slane %v33_v23, %v70_v16  ;;  %v218_v40 = vrot.slane %v203_v28, %v50_v11  ;;  %v222_v41 = vrot.slane %v203_v28, %v54_v12  ;;  %p378_p3 = por %p377_p2, %p376_p1 }
   0xf   :  { %274 = vperm.xlu0 %369, %v269_v8   ;;  %v226_v42 = vrot.slane %v203_v28, %v58_v13  ;;  %v230_v43 = vrot.slane %v203_v28, %v62_v14  ;;  %v234_v44 = vrot.slane %v203_v28, %v66_v15  ;;  %v238_v45 = vrot.slane %v203_v28, %v70_v16 }
  0x10   :  { %v488_v48 = vrot.slane %v271_v37, %v50_v11  ;;  %v490_v49 = vrot.slane %v271_v37, %v54_v12  ;;  %v492_v50 = vrot.slane %v271_v37, %v58_v13  ;;  %v494_v51 = vrot.slane %v271_v37, %v62_v14  ;;  %p379_p4 = pnand %p378_p3, %p372_p0 }
  0x11   :  { %v500_v54 = vrot.slane %v271_v37, %v66_v15  ;;  %v502_v55 = vrot.slane %v271_v37, %v70_v16 }
  0x81   :  { %v139_v46 = vpop.permute.xlu1 %138 }
  0x82   :  { %v40_v47 = vpop.permute.xlu0 %39  ;;  %v496_v52 = vmul.f32 %v150_v19, %v139_v46  ;;  %v498_v53 = vmul.f32 %v154_v20, %v139_v46  ;;  %v504_v56 = vmul.f32 %v158_v21, %v139_v46  ;;  %v506_v57 = vmul.f32 %v162_v22, %v139_v46 }
  0x83   :  { %v78_v58 = vmul.f32 %v51_v26, %v40_v47  ;;  %v79_v59 = vmul.f32 %v55_v27, %v40_v47  ;;  %v80_v60 = vmul.f32 %v59_v29, %v40_v47  ;;  %v81_v61 = vmul.f32 %v63_v30, %v40_v47 }
  0x84   :  { %v82_v62 = vmul.f32 %v67_v31, %v40_v47  ;;  %v83_v63 = vmul.f32 %v71_v32, %v40_v47  ;;  %v508_v0 = vmul.f32 %v166_v24, %v139_v46  ;;  %v510_v1 = vmul.f32 %v170_v25, %v139_v46 }
  0x85   :  { %v121_v2 = vadd.f32 %v94_v33, %v78_v58  ;;  %v122_v3 = vadd.f32 %v98_v34, %v79_v59  ;;  %v144_v4 = vpop.permute.xlu1 %143  ;;  %v512_v6 = vadd.f32 %v102_v35, %v80_v60  ;;  %v514_v7 = vadd.f32 %v106_v36, %v81_v61 }
  0x86   :  { %v45_v5 = vpop.permute.xlu0 %44  ;;  %v516_v8 = vadd.f32 %v110_v38, %v82_v62  ;;  %v518_v9 = vadd.f32 %v114_v39, %v83_v63  ;;  %v183_v10 = vmul.f32 %v150_v19, %v144_v4  ;;  %v184_v11 = vmul.f32 %v154_v20, %v144_v4 }
  0x87   :  { %v185_v12 = vmul.f32 %v158_v21, %v144_v4  ;;  %v186_v13 = vmul.f32 %v162_v22, %v144_v4  ;;  %v187_v14 = vmul.f32 %v166_v24, %v144_v4  ;;  %v188_v15 = vmul.f32 %v170_v25, %v144_v4 }
  0x88   :  { %v84_v16 = vmul.f32 %v51_v26, %v45_v5  ;;  %v85_v17 = vmul.f32 %v55_v27, %v45_v5  ;;  %v86_v18 = vmul.f32 %v59_v29, %v45_v5  ;;  %v87_v23 = vmul.f32 %v63_v30, %v45_v5 }
  0x89   :  { %v88_v28 = vmul.f32 %v67_v31, %v45_v5  ;;  %v89_v37 = vmul.f32 %v71_v32, %v45_v5  ;;  %v212_v46 = vpop.permute.xlu1 %211 }
  0x8a   :  { %v127_v47 = vadd.f32 %v94_v33, %v84_v16  ;;  %v128_v58 = vadd.f32 %v98_v34, %v85_v17  ;;  %v251_v59 = vmul.f32 %v218_v40, %v212_v46  ;;  %v252_v60 = vmul.f32 %v222_v41, %v212_v46  ;;  %v207_v61 = vpop.permute.xlu0 %206 }
  0x8b   :  { %v129_v62 = vadd.f32 %v102_v35, %v86_v18  ;;  %v130_v63 = vadd.f32 %v106_v36, %v87_v23  ;;  %v131_v19 = vadd.f32 %v110_v38, %v88_v28  ;;  %v132_v20 = vadd.f32 %v114_v39, %v89_v37 }
  0x8c   :  { %v253_v21 = vmul.f32 %v226_v42, %v212_v46  ;;  %v254_v22 = vmul.f32 %v230_v43, %v212_v46  ;;  %v255_v24 = vmul.f32 %v234_v44, %v212_v46  ;;  %v256_v25 = vmul.f32 %v238_v45, %v212_v46 }
  0x8d   :  { %v245_v26 = vmul.f32 %v218_v40, %v207_v61  ;;  %v246_v27 = vmul.f32 %v222_v41, %v207_v61  ;;  %v247_v29 = vmul.f32 %v226_v42, %v207_v61  ;;  %v248_v30 = vmul.f32 %v230_v43, %v207_v61  ;;  %v280_v31 = vpop.permute.xlu1 %279 }
  0x8e   :  { %v249_v32 = vmul.f32 %v234_v44, %v207_v61  ;;  %v250_v4 = vmul.f32 %v238_v45, %v207_v61  ;;  %v195_v33 = vadd.f32 %v183_v10, %v127_v47  ;;  %v196_v34 = vadd.f32 %v184_v11, %v128_v58 }
  0x8f   :  { %v197_v5 = vadd.f32 %v185_v12, %v129_v62  ;;  %v198_v16 = vadd.f32 %v186_v13, %v130_v63  ;;  %v199_v17 = vadd.f32 %v187_v14, %v131_v19  ;;  %v200_v35 = vadd.f32 %v188_v15, %v132_v20  ;;  %v275_v13 = vpop.permute.xlu0 %274 }
  0x90   :  { %v263_v36 = vadd.f32 %v251_v59, %v195_v33  ;;  %v264_v38 = vadd.f32 %v252_v60, %v196_v34  ;;  %v319_v39 = vmul.f32 %v488_v48, %v280_v31  ;;  %v320_v18 = vmul.f32 %v490_v49, %v280_v31 }
  0x91   :  { %v265_v23 = vadd.f32 %v253_v21, %v197_v5  ;;  %v266_v40 = vadd.f32 %v254_v22, %v198_v16  ;;  %v267_v41 = vadd.f32 %v255_v24, %v199_v17  ;;  %v268_v42 = vadd.f32 %v256_v25, %v200_v35 }
  0x92   :  { %v321_v43 = vmul.f32 %v492_v50, %v280_v31  ;;  %v322_v44 = vmul.f32 %v494_v51, %v280_v31  ;;  %v323_v45 = vmul.f32 %v500_v54, %v280_v31  ;;  %v324_v10 = vmul.f32 %v502_v55, %v280_v31 }
  0x93   :  { %v331_v11 = vadd.f32 %v319_v39, %v263_v36  ;;  %v332_v12 = vadd.f32 %v320_v18, %v264_v38  ;;  %v189_v14 = vadd.f32 %v496_v52, %v121_v2  ;;  %v190_v15 = vadd.f32 %v498_v53, %v122_v3 }
  0x94   :  { %v333_v28 = vadd.f32 %v321_v43, %v265_v23  ;;  %v334_v37 = vadd.f32 %v322_v44, %v266_v40  ;;  %v335_v46 = vadd.f32 %v323_v45, %v267_v41  ;;  %v336_v47 = vadd.f32 %v324_v10, %v268_v42 }
  0x95   :  { %343 = vst [vmem:[#allocation2 + $0x30] sm:$0xff] %v331_v11  ;;  %344 = vst [vmem:[#allocation2 + $0x38] sm:$0xff] %v332_v12  ;;  %v191_v58 = vadd.f32 %v504_v56, %v512_v6  ;;  %v192_v59 = vadd.f32 %v506_v57, %v514_v7  ;;  %v193_v60 = vadd.f32 %v508_v0, %v516_v8 }
  0x96   :  { %v194_v52 = vadd.f32 %v510_v1, %v518_v9  ;;  %345 = vst [vmem:[#allocation2 + $0x40] sm:$0xff] %v333_v28  ;;  %346 = vst [vmem:[#allocation2 + $0x48] sm:$0xff] %v334_v37  ;;  %v257_v53 = vadd.f32 %v245_v26, %v189_v14  ;;  %v258_v2 = vadd.f32 %v246_v27, %v190_v15 }
  0x97   :  { %347 = vst [vmem:[#allocation2 + $0x50] sm:$0xff] %v335_v46  ;;  %348 = vst [vmem:[#allocation2 + $0x58] sm:$0xff] %v336_v47  ;;  %v313_v3 = vmul.f32 %v488_v48, %v275_v13  ;;  %v314_v61 = vmul.f32 %v490_v49, %v275_v13  ;;  %v259_v56 = vadd.f32 %v247_v29, %v191_v58 }
  0x98   :  { %v260_v6 = vadd.f32 %v248_v30, %v192_v59  ;;  %v261_v62 = vadd.f32 %v249_v32, %v193_v60  ;;  %v262_v57 = vadd.f32 %v250_v4, %v194_v52  ;;  %v315_v0 = vmul.f32 %v492_v50, %v275_v13 }
  0x99   :  { %v316_v1 = vmul.f32 %v494_v51, %v275_v13  ;;  %v317_v7 = vmul.f32 %v500_v54, %v275_v13  ;;  %v318_v8 = vmul.f32 %v502_v55, %v275_v13  ;;  %v325_v9 = vadd.f32 %v313_v3, %v257_v53 }
  0x9a   :  { %v326_v63 = vadd.f32 %v314_v61, %v258_v2  ;;  %v327_v19 = vadd.f32 %v315_v0, %v259_v56 }
  0x9b   :  { %v328_v48 = vadd.f32 %v316_v1, %v260_v6  ;;  %v329_v20 = vadd.f32 %v317_v7, %v261_v62  ;;  %v330_v49 = vadd.f32 %v318_v8, %v262_v57  ;;  %337 = vst [vmem:[#allocation2] sm:$0xff] %v325_v9 }
  0x9c   :  { %338 = vst [vmem:[#allocation2 + $0x8] sm:$0xff] %v326_v63  ;;  %339 = vst [vmem:[#allocation2 + $0x10] sm:$0xff] %v327_v19 }
  0x9d   :  { %340 = vst [vmem:[#allocation2 + $0x18] sm:$0xff] %v328_v48  ;;  %341 = vst [vmem:[#allocation2 + $0x20] sm:$0xff] %v329_v20 }
  0x9e   :  { %342 = vst [vmem:[#allocation2 + $0x28] sm:$0xff] %v330_v49 }
  0x9f   :  { %382 = shalt.err (!%p379_p4)
}
  0xa0   :  { %s383_s10 = scalar_lea.hbm %s563_s9, 1536 }
  0xa1   :  { %p384_p5 = scmp.ne.s32.totalorder %s563_s9, %s383_s10  ;;  %p387_p6 = scmp.lt.u32.totalorder %s383_s10, %s563_s9 }
  0xa3   :  { %p389_p7 = pnand %p387_p6, %p384_p5 }
  0xa5   :  { %392 = shalt.err (!%p389_p7)
}
  0xa6   :  { %s397_s15 = smov 768   ;;  %s398_s16 = smov 48  }
  0xa7   :  { %360 = dma.vmem_to_hbm [thread:$0]  %s355_s7, 1536, %s563_s9, [#allocation3], %s397_s15, %s397_s15, %s398_s16  }
  0xa8   :  { %393 = dma.done.wait [#allocation3], 1536  }
  0xa9   :  { %394 = vsyncadd [#allocation3], 4294965760 }
  0xaa   :  { %364 = vsyncpa [#allocation3], 1 }

</bundles_post_ra>
